<compile_context>
chip_gen: v5e
topology: v5e:2x2
jax: 0.10.0
libtpu: 0.0.40
codegen_flags: <defaults>
</compile_context>

<pallas_src>
import functools
import math

import jax
import jax.numpy as jnp
from jax.experimental import pallas as pl
from jax.experimental.pallas import tpu as pltpu


def _cdiv(a, b):
    return -(-a // b)


def _round_up(x, m):
    return ((x + m - 1) // m) * m


def _tdnnf_kernel(x_ref, wb_ref, wa_ref, ba_ref, out_ref, *,
                  ctx, sub, tw, use_bypass, lidx, bypass_scale, compute_dtype):
    """One (batch b, window-tile t) grid step.

    x_ref  : (1, sub, Tq, D_pad)  phase-split raw frames of batch b (resident per b)
    wb_ref : (ctx, D_pad, Bn_pad) per-context slabs of linearB weight (resident)
    wa_ref : (Bn_pad, Out_pad)    transposed linearA weight            (resident)
    ba_ref : (1, Out_pad)         folded bias  bA + bB @ wA^T   (f32)  (resident)
    out_ref: (1, tw, Out_pad)

    Global window w = t*tw + j needs raw frame  w*sub + c  which lives at
    phase (c % sub), row (w + c // sub) of the phase-split block.
    """
    t = pl.program_id(1)
    q0 = pl.multiple_of(t * tw, 8)          # tw is a multiple of 8

    acc = None
    for c in range(ctx):                    # static unroll; ctx is tiny (1..4)
        xc = x_ref[0, c % sub, pl.ds(q0 + c // sub, tw), :]          # (tw, D_pad)
        part = jnp.dot(xc, wb_ref[c], preferred_element_type=jnp.float32)
        acc = part if acc is None else acc + part                    # (tw, Bn_pad) f32

    # bottleneck_ld == identity (default)
    y = jnp.dot(acc.astype(compute_dtype), wa_ref[...],
                preferred_element_type=jnp.float32)                  # (tw, Out_pad)
    y = y + ba_ref[...]

    if use_bypass:
        # use_bypass implies D == output_dim, hence D_pad == Out_pad: the
        # zero-padded lanes of the raw frame line up with the zero-padded
        # output lanes -> plain full-width add (no concat / masked update).
        xb = x_ref[0, lidx % sub, pl.ds(q0 + lidx // sub, tw), :]    # (tw, Out_pad)
        y = y + xb.astype(jnp.float32) * bypass_scale

    out_ref[0] = y.astype(out_ref.dtype)


def tdnnf_ld_forward(x, params, *, context_len, subsampling_factor,
                     bypass_scale, compute_dtype=jnp.bfloat16):
    """x: (mb, T, D) float32. Returns (mb, Nw, output_dim) float32."""
    mb, T, D = x.shape
    wB, bB, wA, bA = params
    bottleneck_dim, feat_in = wB.shape
    output_dim = wA.shape[0]
    ctx = int(context_len)
    sub = int(subsampling_factor)
    assert feat_in == D * ctx and T >= ctx
    Nw = (T - ctx) // sub + 1

    # --- lane-dense padding targets ---
    d_pad = D if D % 128 == 0 else _round_up(D, 128)
    bn_pad = _round_up(bottleneck_dim, 128)
    out_pad = _round_up(output_dim, 128)
    cb = jnp.dtype(compute_dtype).itemsize

    # --- window-tile size from a VMEM byte budget (double-buffered blocks +
    #     resident weights + in-kernel temporaries) ---
    def vmem_est(tw_):
        nwt = _cdiv(Nw, tw_) * tw_
        tq_ = nwt + (ctx - 1) // sub
        return (2 * sub * tq_ * d_pad * cb                      # input block   (x2 buf)
                + 2 * tw_ * out_pad * 4                         # output block  (x2 buf)
                + 2 * (ctx * d_pad * bn_pad + bn_pad * out_pad) * cb   # weights (x2)
                + 2 * out_pad * 4                               # folded bias
                + tw_ * (bn_pad + out_pad) * 4                  # f32 temporaries
                + (ctx + 1) * tw_ * d_pad * cb + tw_ * bn_pad * cb)

    budget = 24 * 2 ** 20          # conservative for v7x 64 MiB / v5e scoped VMEM
    tw = min(_round_up(Nw, 8), 512)
    while tw > 8 and vmem_est(tw) > budget:
        tw = _round_up(max(8, tw // 2), 8)
    n_wt = _cdiv(Nw, tw)
    if mb == 1 and n_wt == 1 and Nw > 8:
        n_wt = 2                                   # expose >=2 grid steps (megacore)
    tw = _round_up(_cdiv(Nw, n_wt), 8)             # rebalance: fewer padded windows
    n_wt = _cdiv(Nw, tw)
    nw_total = n_wt * tw
    tq = nw_total + (ctx - 1) // sub
    t_span = tq * sub

    # --- raw input, phase-split along time (no ctx-duplicated unfold) ---
    if T >= t_span:
        xt = x[:, :t_span, :]
    else:
        xt = jnp.pad(x, ((0, 0), (0, t_span - T), (0, 0)))
    if d_pad > D:
        xt = jnp.pad(xt, ((0, 0), (0, 0), (0, d_pad - D)))
    xt = xt.astype(compute_dtype)
    if sub > 1:
        xp = xt.reshape(mb, tq, sub, d_pad).transpose(0, 2, 1, 3)   # (mb, sub, Tq, Dp)
    else:
        xp = xt.reshape(mb, 1, tq, d_pad)

    # --- weights: per-context slabs of wB^T, transposed wA, folded bias ---
    wb_stack = wB.reshape(bottleneck_dim, ctx, D).transpose(1, 2, 0)   # (ctx, D, Bn)
    wb_stack = jnp.pad(wb_stack, ((0, 0), (0, d_pad - D),
                                  (0, bn_pad - bottleneck_dim)))
    wa_t = wA.T                                                        # (Bn, Out)
    ba_eff = (bA + bB @ wa_t).astype(jnp.float32)                      # exact fold (f32)
    wa_t = jnp.pad(wa_t, ((0, bn_pad - bottleneck_dim),
                          (0, out_pad - output_dim)))
    ba_eff = jnp.pad(ba_eff, ((0, 0), (0, out_pad - output_dim)))
    wb_stack = wb_stack.astype(compute_dtype)
    wa_t = wa_t.astype(compute_dtype)

    use_bypass = (bypass_scale > 0.0) and (D == output_dim)
    lidx = ctx // 2 if ctx > 1 else 0

    kernel = functools.partial(
        _tdnnf_kernel,
        ctx=ctx, sub=sub, tw=tw,
        use_bypass=use_bypass, lidx=lidx,
        bypass_scale=float(bypass_scale),
        compute_dtype=compute_dtype)

    cost = pl.CostEstimate(
        flops=2 * mb * nw_total * (ctx * d_pad * bn_pad + bn_pad * out_pad),
        transcendentals=0,
        bytes_accessed=int(cb * (mb * sub * tq * d_pad
                                 + ctx * d_pad * bn_pad + bn_pad * out_pad)
                           + 4 * (out_pad + mb * nw_total * out_pad)))

    vmem_limit = int(max(32 * 2 ** 20, min(2 * vmem_est(tw), 64 * 2 ** 20)))

    out = pl.pallas_call(
        kernel,
        out_shape=jax.ShapeDtypeStruct((mb, nw_total, out_pad), jnp.float32),
        grid_spec=pltpu.PrefetchScalarGridSpec(
            num_scalar_prefetch=0,
            grid=(mb, n_wt),
            in_specs=[
                pl.BlockSpec((1, sub, tq, d_pad), lambda b, t: (b, 0, 0, 0)),
                pl.BlockSpec((ctx, d_pad, bn_pad), lambda b, t: (0, 0, 0)),   # resident
                pl.BlockSpec((bn_pad, out_pad), lambda b, t: (0, 0)),         # resident
                pl.BlockSpec((1, out_pad), lambda b, t: (0, 0)),              # resident
            ],
            out_specs=pl.BlockSpec((1, tw, out_pad), lambda b, t: (b, t, 0)),
        ),
        compiler_params=pltpu.CompilerParams(
            dimension_semantics=("parallel", "parallel"),
            vmem_limit_bytes=vmem_limit),
        cost_estimate=cost,
    )(xp, wb_stack, wa_t, ba_eff)

    return out[:, :Nw, :output_dim]


def init_params(key, feat_dim, output_dim, bottleneck_dim, context_len):
    """Deterministic parameter init mirroring the module's shapes."""
    k1, k2, k3, k4 = jax.random.split(key, 4)
    feat_in = feat_dim * context_len
    # NaturalAffineTransform.init_parameters: normal / sqrt(feat_in * out)
    wB = (jax.random.normal(k1, (bottleneck_dim, feat_in), jnp.float32)
          / math.sqrt(feat_in * bottleneck_dim))
    bB = jax.random.normal(k2, (1, bottleneck_dim), jnp.float32)
    # nn.Linear(bottleneck_dim, output_dim): uniform(-1/sqrt(in), 1/sqrt(in))
    bound = 1.0 / math.sqrt(bottleneck_dim)
    wA = jax.random.uniform(k3, (output_dim, bottleneck_dim), jnp.float32,
                            -bound, bound)
    bA = jax.random.uniform(k4, (1, output_dim), jnp.float32, -bound, bound)
    return wB, bB, wA, bA


def reference_forward(x, params, *, context_len, subsampling_factor,
                      bypass_scale):
    """Pure-JAX reference mirroring the PyTorch unfold / bypass slicing."""
    mb, T, D = x.shape
    wB, bB, wA, bA = params
    num_windows = (T - context_len) // subsampling_factor + 1
    flat = x.reshape(mb, T * D)
    idx = (jnp.arange(num_windows)[:, None] * (D * subsampling_factor)
           + jnp.arange(D * context_len)[None, :])
    unf = flat[:, idx]
    h = unf @ wB.T + bB
    y = h @ wA.T + bA
    if bypass_scale > 0.0 and D == wA.shape[0]:
        if context_len > 1:
            lidx = context_len // 2
            ridx = -lidx if context_len % 2 == 1 else -lidx + 1
            if context_len == 2:
                lidx, ridx = 1, None
        else:
            lidx, ridx = 0, None
        y = y + x[:, lidx:ridx:subsampling_factor, :] * bypass_scale
    return y


if __name__ == "__main__":
    key = jax.random.PRNGKey(0)

    # (mb, T, feat_dim, output_dim, bottleneck, ctx, sub, bypass_scale)
    configs = [
        (2, 16, 32, 32, 16, 3, 1, 0.66),   # odd context, bypass active
        (2, 17, 32, 32, 16, 4, 1, 0.66),   # even context, bypass active
        (2, 20, 32, 48, 16, 2, 3, 0.66),   # subsampled, no bypass (D != out)
    ]

    for cfg_i, (mb, T, feat_dim, output_dim, bottleneck_dim,
                context_len, sub, bscale) in enumerate(configs):
        kx, kp, key = jax.random.split(key, 3)
        x = jax.random.normal(kx, (mb, T, feat_dim), jnp.float32)
        params = init_params(kp, feat_dim, output_dim, bottleneck_dim,
                             context_len)
        ref = reference_forward(x, params,
                                context_len=context_len,
                                subsampling_factor=sub,
                                bypass_scale=bscale)

        # f32 compute path: tight check (exact math path).
        out32 = tdnnf_ld_forward(x, params,
                                 context_len=context_len,
                                 subsampling_factor=sub,
                                 bypass_scale=bscale,
                                 compute_dtype=jnp.float32)
        out32 = jax.block_until_ready(out32)
        assert out32.shape == ref.shape, (cfg_i, out32.shape, ref.shape)
        assert jnp.allclose(out32, ref, atol=1e-4, rtol=1e-4), cfg_i

        # bf16 compute path (production default): f32 accumulation, loose check.
        out16 = tdnnf_ld_forward(x, params,
                                 context_len=context_len,
                                 subsampling_factor=sub,
                                 bypass_scale=bscale,
                                 compute_dtype=jnp.bfloat16)
        out16 = jax.block_until_ready(out16)
        assert out16.shape == ref.shape, (cfg_i, out16.shape, ref.shape)
        assert jnp.allclose(out16, ref, atol=5e-2, rtol=5e-2), cfg_i

    print("KERNEL_OK")
</pallas_src>

<mosaic_0001>
module attributes {stable_mosaic.version = 11 : i64} {
  func.func @_tdnnf_kernel(%arg0: i32, %arg1: i32, %arg2: memref<1x1x18x128xf32, #tpu.memory_space<vmem>>, %arg3: memref<3x128x128xf32, #tpu.memory_space<vmem>>, %arg4: memref<128x128xf32, #tpu.memory_space<vmem>>, %arg5: memref<1x128xf32, #tpu.memory_space<vmem>>, %arg6: memref<1x16x128xf32, #tpu.memory_space<vmem>>) attributes {dimension_semantics = [#tpu.dimension_semantics<parallel>, #tpu.dimension_semantics<parallel>], iteration_bounds = array<i64: 2, 1>, scalar_prefetch = 0 : i64, scratch_operands = 0 : i64, tpu.core_type = #tpu.core_type<tc>, window_params = [{transform_indices = @transform_0, window_bounds = array<i64: 1, 1, 18, 128>}, {pipeline_mode = #tpu.pipeline_mode<synchronous>, transform_indices = @transform_1, window_bounds = array<i64: 3, 128, 128>}, {pipeline_mode = #tpu.pipeline_mode<synchronous>, transform_indices = @transform_2, window_bounds = array<i64: 128, 128>}, {pipeline_mode = #tpu.pipeline_mode<synchronous>, transform_indices = @transform_3, window_bounds = array<i64: 1, 128>}, {transform_indices = @transform_4, window_bounds = array<i64: 1, 16, 128>}]} {
    %c16_i32 = arith.constant 16 : i32
    %0 = arith.muli %arg1, %c16_i32 : i32
    %1 = tpu.assume_multiple %0, 8 : i32
    %c0_i32 = arith.constant 0 : i32
    %2 = arith.addi %1, %c0_i32 : i32
    %c0 = arith.constant 0 : index
    %c0_0 = arith.constant 0 : index
    %3 = arith.index_cast %2 : i32 to index
    %c0_1 = arith.constant 0 : index
    %4 = vector.load %arg2[%c0, %c0_0, %3, %c0_1] : memref<1x1x18x128xf32, #tpu.memory_space<vmem>>, vector<1x1x16x128xf32>
    %5 = vector.shape_cast %4 : vector<1x1x16x128xf32> to vector<16x128xf32>
    %c0_2 = arith.constant 0 : index
    %c0_3 = arith.constant 0 : index
    %c0_4 = arith.constant 0 : index
    %6 = vector.load %arg3[%c0_2, %c0_3, %c0_4] : memref<3x128x128xf32, #tpu.memory_space<vmem>>, vector<1x128x128xf32>
    %7 = vector.shape_cast %6 : vector<1x128x128xf32> to vector<128x128xf32>
    %cst = arith.constant dense<0.000000e+00> : vector<16x128xf32>
    %8 = tpu.matmul %5, %7, %cst {dimension_numbers = #tpu.dot_dimension_numbers<[1], [0], [0], [1], [0, 0, 1, 1], [], []>} : vector<16x128xf32>, vector<128x128xf32>, vector<16x128xf32> -> vector<16x128xf32>
    %c1_i32 = arith.constant 1 : i32
    %9 = arith.addi %1, %c1_i32 : i32
    %c0_5 = arith.constant 0 : index
    %c0_6 = arith.constant 0 : index
    %10 = arith.index_cast %9 : i32 to index
    %c0_7 = arith.constant 0 : index
    %11 = vector.load %arg2[%c0_5, %c0_6, %10, %c0_7] : memref<1x1x18x128xf32, #tpu.memory_space<vmem>>, vector<1x1x16x128xf32>
    %12 = vector.shape_cast %11 : vector<1x1x16x128xf32> to vector<16x128xf32>
    %c1 = arith.constant 1 : index
    %c0_8 = arith.constant 0 : index
    %c0_9 = arith.constant 0 : index
    %13 = vector.load %arg3[%c1, %c0_8, %c0_9] : memref<3x128x128xf32, #tpu.memory_space<vmem>>, vector<1x128x128xf32>
    %14 = vector.shape_cast %13 : vector<1x128x128xf32> to vector<128x128xf32>
    %cst_10 = arith.constant dense<0.000000e+00> : vector<16x128xf32>
    %15 = tpu.matmul %12, %14, %cst_10 {dimension_numbers = #tpu.dot_dimension_numbers<[1], [0], [0], [1], [0, 0, 1, 1], [], []>} : vector<16x128xf32>, vector<128x128xf32>, vector<16x128xf32> -> vector<16x128xf32>
    %16 = arith.addf %8, %15 : vector<16x128xf32>
    %c2_i32 = arith.constant 2 : i32
    %17 = arith.addi %1, %c2_i32 : i32
    %c0_11 = arith.constant 0 : index
    %c0_12 = arith.constant 0 : index
    %18 = arith.index_cast %17 : i32 to index
    %c0_13 = arith.constant 0 : index
    %19 = vector.load %arg2[%c0_11, %c0_12, %18, %c0_13] : memref<1x1x18x128xf32, #tpu.memory_space<vmem>>, vector<1x1x16x128xf32>
    %20 = vector.shape_cast %19 : vector<1x1x16x128xf32> to vector<16x128xf32>
    %c2 = arith.constant 2 : index
    %c0_14 = arith.constant 0 : index
    %c0_15 = arith.constant 0 : index
    %21 = vector.load %arg3[%c2, %c0_14, %c0_15] : memref<3x128x128xf32, #tpu.memory_space<vmem>>, vector<1x128x128xf32>
    %22 = vector.shape_cast %21 : vector<1x128x128xf32> to vector<128x128xf32>
    %cst_16 = arith.constant dense<0.000000e+00> : vector<16x128xf32>
    %23 = tpu.matmul %20, %22, %cst_16 {dimension_numbers = #tpu.dot_dimension_numbers<[1], [0], [0], [1], [0, 0, 1, 1], [], []>} : vector<16x128xf32>, vector<128x128xf32>, vector<16x128xf32> -> vector<16x128xf32>
    %24 = arith.addf %16, %23 : vector<16x128xf32>
    %c0_17 = arith.constant 0 : index
    %c0_18 = arith.constant 0 : index
    %25 = vector.load %arg4[%c0_17, %c0_18] : memref<128x128xf32, #tpu.memory_space<vmem>>, vector<128x128xf32>
    %cst_19 = arith.constant dense<0.000000e+00> : vector<16x128xf32>
    %26 = tpu.matmul %24, %25, %cst_19 {dimension_numbers = #tpu.dot_dimension_numbers<[1], [0], [0], [1], [0, 0, 1, 1], [], []>} : vector<16x128xf32>, vector<128x128xf32>, vector<16x128xf32> -> vector<16x128xf32>
    %c0_20 = arith.constant 0 : index
    %c0_21 = arith.constant 0 : index
    %27 = vector.load %arg5[%c0_20, %c0_21] : memref<1x128xf32, #tpu.memory_space<vmem>>, vector<1x128xf32>
    %28 = vector.broadcast %27 : vector<1x128xf32> to vector<16x128xf32>
    %29 = arith.addf %26, %28 : vector<16x128xf32>
    %c1_i32_22 = arith.constant 1 : i32
    %30 = arith.addi %1, %c1_i32_22 : i32
    %c0_23 = arith.constant 0 : index
    %c0_24 = arith.constant 0 : index
    %31 = arith.index_cast %30 : i32 to index
    %c0_25 = arith.constant 0 : index
    %32 = vector.load %arg2[%c0_23, %c0_24, %31, %c0_25] : memref<1x1x18x128xf32, #tpu.memory_space<vmem>>, vector<1x1x16x128xf32>
    %33 = vector.shape_cast %32 : vector<1x1x16x128xf32> to vector<16x128xf32>
    %cst_26 = arith.constant 6.600000e-01 : f32
    %34 = vector.broadcast %cst_26 : f32 to vector<16x128xf32>
    %35 = arith.mulf %33, %34 : vector<16x128xf32>
    %36 = arith.addf %29, %35 : vector<16x128xf32>
    %c0_27 = arith.constant 0 : index
    %c0_28 = arith.constant 0 : index
    %c0_29 = arith.constant 0 : index
    %37 = vector.load %arg6[%c0_27, %c0_28, %c0_29] : memref<1x16x128xf32, #tpu.memory_space<vmem>>, vector<1x16x128xf32>
    %38 = vector.shape_cast %37 : vector<1x16x128xf32> to vector<16x128xf32>
    %39 = vector.shape_cast %36 : vector<16x128xf32> to vector<1x16x128xf32>
    tpu.vector_store %arg6[%c0_27, %c0_28, %c0_29], %39 {strides = array<i32>} : memref<1x16x128xf32, #tpu.memory_space<vmem>>, vector<1x16x128xf32>,
    return
  }
  func.func @transform_0(%arg0: i32, %arg1: i32) -> (i32, i32, i32, i32) {
    %c0_i32 = arith.constant 0 : i32
    %c0_i32_0 = arith.constant 0 : i32
    %c0_i32_1 = arith.constant 0 : i32
    %c0_i32_2 = arith.constant 0 : i32
    return %arg0, %c0_i32, %c0_i32_0, %c0_i32_1 : i32, i32, i32, i32
  }
  func.func @transform_1(%arg0: i32, %arg1: i32) -> (i32, i32, i32) {
    %c0_i32 = arith.constant 0 : i32
    %c0_i32_0 = arith.constant 0 : i32
    %c0_i32_1 = arith.constant 0 : i32
    %c0_i32_2 = arith.constant 0 : i32
    return %c0_i32, %c0_i32_0, %c0_i32_1 : i32, i32, i32
  }
  func.func @transform_2(%arg0: i32, %arg1: i32) -> (i32, i32) {
    %c0_i32 = arith.constant 0 : i32
    %c0_i32_0 = arith.constant 0 : i32
    %c0_i32_1 = arith.constant 0 : i32
    return %c0_i32, %c0_i32_0 : i32, i32
  }
  func.func @transform_3(%arg0: i32, %arg1: i32) -> (i32, i32) {
    %c0_i32 = arith.constant 0 : i32
    %c0_i32_0 = arith.constant 0 : i32
    %c0_i32_1 = arith.constant 0 : i32
    return %c0_i32, %c0_i32_0 : i32, i32
  }
  func.func @transform_4(%arg0: i32, %arg1: i32) -> (i32, i32, i32) {
    %c0_i32 = arith.constant 0 : i32
    %c0_i32_0 = arith.constant 0 : i32
    return %arg0, %arg1, %c0_i32 : i32, i32, i32
  }
}

</mosaic_0001>

<bundles_post_ra>
// kernel: tpu_custom_call.1
= control target key start
LH: loop header
LB: loop body
LE: loop exit
PB: predicated region body
PF: predicated region fallthrough
CT: control target
= control target key end

     0   :  { %9 = vsyncpa [#allocation3], 0  ;;  %s969_s0 = inlined_call_operand.vmem [shape: f32[2,1,18,128], index: 0, kind: input, shape index: {}]   ;;  %s970_s1 = inlined_call_operand.hbm [shape: f32[3,128,128], index: 1, kind: input, shape index: {}]   ;;  %s971_s2 = inlined_call_operand.hbm [shape: f32[128,128], index: 2, kind: input, shape index: {}]   ;;  %s972_s3 = inlined_call_operand.vmem [shape: f32[1,128], index: 3, kind: input, shape index: {}]   ;;  %s973_s4 = inlined_call_operand.hbm [shape: f32[2,16,128], index: 4, kind: output, shape index: {}]  }
   0x1   :  { %10 = vsyncpa [#allocation6], 0 }
   0x2   :  { %11 = vsyncpa [#allocation4], 0 }
   0x3   :  { %13 = vsyncpa [#allocation4 + $0x1], 0  ;;  %s830_s15 = smov 0   ;;  %s832_s16 = smov 0  }
   0x4   :  { %s834_s17 = smov 0   ;;  %s836_s18 = smov 0  }
   0x5   :  { %s838_s19 = smov 0   ;;  %s840_s20 = smov 0  }
   0x6 LB: > { %s548_s21 = sadd.s32 4294967295, %s797_s20   ;;  %s549_s22 = sadd.s32 4294967294, %s797_s20   ;;  %s797_s20 = sphi %s840_s20, %s19_s20   ;;  %s793_s19 = sphi %s838_s19, %s982_s19   ;;  %s789_s18 = sphi %s836_s18, %s981_s18   ;;  %s785_s17 = sphi %s834_s17, %s980_s17   ;;  %s781_s16 = sphi %s832_s16, %s979_s16   ;;  %s777_s15 = sphi %s830_s15, %s978_s15  }
   0x7   : > { %s31_s23 = sadd.s32 1, %s793_s19  ;;  %s129_s24 = sadd.s32 1, %s785_s17 }
   0x8   : > { %p33_p0 = scmp.ge.s32.totalorder %s31_s23, 2  ;;  %p139_p1 = scmp.ne.s32.totalorder %s785_s17, %s781_s16 }
   0x9   : > { %p140_p2 = scmp.eq.s32.totalorder %s548_s21, 1  ;;  %p145_p3 = scmp.ne.s32.totalorder %s781_s16, %s777_s15 }
   0xa   : > { %s984_s23 = smov (%p33_p0, %s31_s23), 0  ;;  %p146_p5 = scmp.eq.s32.totalorder %s549_s22, 1 }
   0xb   : > { %p870_p4 = por %p140_p2, %p139_p1  ;;  %s124_s26 = ssub.s32 %s793_s19, %s984_s23 }
   0xc   : > { %p550_p6 = scmp.ge.s32.totalorder %s797_s20, 1  ;;  %p127_p7 = scmp.eq.s32.totalorder %s124_s26, 0 }
   0xd   : > { %p877_p8 = por %p146_p5, %p145_p3  ;;  %p153_p9 = scmp.lt.s32.totalorder %s797_s20, 3 }
   0xe   : > { %s883_s28 = scalar_select %p127_p7, %s785_s17, %s129_s24  }
   0xf   : > { %p885_p10 = pnand %p550_p6, %p153_p9  ;;  %p889_p11 = scmp.eq.s32.totalorder %s548_s21, 0 }
  0x10   : > { %s164_s7 = sshll.u32 %s970_s1, 4  ;;  %s799_s8 = smov [#allocation2]   ;;  %s165_s7 = int_to_ptr.hbm [resolvable:$true] %s164_s7 }
  0x11   : > { %p580_p12 = pneg %p885_p10  ;;  %s166_s9 = sshll.u32 %s799_s8, 4  ;;  %s167_s9 = int_to_ptr.vmem [resolvable:$true] %s166_s9 }
  0x12   : > { %s178_s12 = sshll.u32 %s971_s2, 4  ;;  %s800_s13 = smov 128   ;;  %s179_s12 = int_to_ptr.hbm [resolvable:$true] %s178_s12 }
  0x13   : > { %p581_p13 = pnand %p889_p11, %p580_p12  ;;  %s801_s14 = smov 8  }
  0x14   : > { %s802_s21 = smov [#allocation5]   ;;  %207 = sbr.rel (%p885_p10) target bundleno = 342 (0x156), region = 36 }
  0x15   : > { %583 = dma.hbm_to_vmem [thread:$0]  (!%p581_p13), %s165_s7, 6144, %s167_s9, [#allocation3], %s800_s13, %s800_s13, %s801_s14  }
  0x16   : > { %s180_s22 = sshll.u32 %s802_s21, 4  ;;  %s181_s22 = int_to_ptr.vmem [resolvable:$true] %s180_s22 }
  0x17   : > { %586 = dma.hbm_to_vmem [thread:$0]  (!%p581_p13), %s179_s12, 2048, %s181_s22, [#allocation6], %s800_s13, %s800_s13, %s801_s14  }
  0x19   : > { %764 = dma.done.wait (%p889_p11), [#allocation3], 6144  }
  0x1a   : > { %766 = vsyncadd (%p889_p11), [#allocation3], 4294961152 }
  0x1b   : > { %768 = dma.done.wait (%p889_p11), [#allocation6], 2048  }
  0x1c   : > { %770 = vsyncadd (%p889_p11), [#allocation6], 4294965248  ;;  %v352_v0 = vld [vmem:[#allocation2 + $0x178] sm:$0xff]  ;;  %v351_v1 = vld [vmem:[#allocation2 + $0x170] sm:$0xff]  ;;  %p239_p0 = scmp.lt.s32.totalorder %s789_s18, 1  ;;  %s236_s6 = sand.u32 1, %s781_s16  }
  0x1d   : > { %v285_v2 = vld [vmem:[#allocation2 + $0xf8] sm:$0xff]  ;;  %353 = vmatpush.msra.mxu2 %v352_v0  ;;  %v284_v4 = vld [vmem:[#allocation2 + $0xf0] sm:$0xff]  ;;  %v350_v5 = vld [vmem:[#allocation2 + $0x168] sm:$0xff]  ;;  %s557_s9 = sshll.u32 %s236_s6, 4  ;;  %s568_s10 = sshll.u32 %s789_s18, 4 }
  0x1e   : > { %286 = vmatpush.msra.mxu0 %v285_v2  ;;  %v264_v3 = vld [vmem:[#allocation2 + $0x78] sm:$0xff]  ;;  %v263_v6 = vld [vmem:[#allocation2 + $0x70] sm:$0xff]  ;;  %v283_v7 = vld [vmem:[#allocation2 + $0xe8] sm:$0xff]  ;;  %s915_s24 = scalar_select %p239_p0, %s789_s18, 1 }
  0x1f   : > { %309 = vmatpush.msra.mxu1 %v264_v3  ;;  %354 = vmatpush.msra.mxu2 %v351_v1  ;;  %v262_v8 = vld [vmem:[#allocation2 + $0x68] sm:$0xff]  ;;  %v349_v9 = vld [vmem:[#allocation2 + $0x160] sm:$0xff]  ;;  %v348_v12 = vld [vmem:[#allocation2 + $0x158] sm:$0xff]  ;;  %s441_s13 = scalar_lea.hbm %s973_s4, %s568_s10  ;;  %s238_s14 = scalar_lea.vmem [#allocation7], %s557_s9 }
  0x20   : > { %287 = vmatpush.msra.mxu0 %v284_v4  ;;  %v282_v10 = vld [vmem:[#allocation2 + $0xe0] sm:$0xff]  ;;  %v281_v13 = vld [vmem:[#allocation2 + $0xd8] sm:$0xff]  ;;  %v347_v15 = vld [vmem:[#allocation2 + $0x150] sm:$0xff]  ;;  %s569_s26 = smul.u32 24, %s915_s24  ;;  %s442_s21 = sshll.u32 %s238_s14, 4  ;;  %s443_s21 = int_to_ptr.vmem [resolvable:$true] %s442_s21 }
  0x21   : > { %310 = vmatpush.msra.mxu1 %v263_v6  ;;  %355 = vmatpush.msra.mxu2 %v350_v5  ;;  %v261_v11 = vld [vmem:[#allocation2 + $0x60] sm:$0xff]  ;;  %v260_v14 = vld [vmem:[#allocation2 + $0x58] sm:$0xff]  ;;  %v280_v16 = vld [vmem:[#allocation2 + $0xd0] sm:$0xff]  ;;  %s444_s22 = sshll.u32 %s441_s13, 4  ;;  %s428_s24 = scalar_lea.sflag [#allocation4], %s236_s6  ;;  %s445_s22 = int_to_ptr.hbm [resolvable:$true] %s444_s22 }
  0x22   : > { %288 = vmatpush.msra.mxu0 %v283_v7  ;;  %v259_v17 = vld [vmem:[#allocation2 + $0x50] sm:$0xff]  ;;  %v346_v18 = vld [vmem:[#allocation2 + $0x148] sm:$0xff]  ;;  %v345_v21 = vld [vmem:[#allocation2 + $0x140] sm:$0xff]  ;;  %s921_s5 = scalar_lea.vmem %s969_s0, %s569_s26  ;;  %s725_s26 = sshra.s32 %s445_s22, 4  ;;  %s726_s26 = int_to_ptr.hbm [resolvable:$true] %s725_s26 }
  0x23   : > { %311 = vmatpush.msra.mxu1 %v262_v8  ;;  %356 = vmatpush.msra.mxu2 %v349_v9  ;;  %v279_v19 = vld [vmem:[#allocation2 + $0xc8] sm:$0xff]  ;;  %v278_v22 = vld [vmem:[#allocation2 + $0xc0] sm:$0xff]  ;;  %v344_v24 = vld [vmem:[#allocation2 + $0x138] sm:$0xff]  ;;  %s727_s18 = scalar_lea.hbm %s726_s26, 16  ;;  %p732_p5 = scmp.lt.s32.totalorder %s726_s26, %s973_s4 }
  0x24   : > { %289 = vmatpush.msra.mxu0 %v282_v10  ;;  %v258_v20 = vld [vmem:[#allocation2 + $0x48] sm:$0xff]  ;;  %v257_v23 = vld [vmem:[#allocation2 + $0x40] sm:$0xff]  ;;  %v277_v25 = vld [vmem:[#allocation2 + $0xb8] sm:$0xff]  ;;  %p728_p1 = scmp.ne.s32.totalorder %s726_s26, %s727_s18 }
  0x25   : > { %312 = vmatpush.msra.mxu1 %v261_v11  ;;  %357 = vmatpush.msra.mxu2 %v348_v12  ;;  %v256_v26 = vld [vmem:[#allocation2 + $0x38] sm:$0xff]  ;;  %v343_v27 = vld [vmem:[#allocation2 + $0x130] sm:$0xff]  ;;  %v342_v30 = vld [vmem:[#allocation2 + $0x128] sm:$0xff] }
  0x26   : > { %290 = vmatpush.msra.mxu0 %v281_v13  ;;  %v276_v28 = vld [vmem:[#allocation2 + $0xb0] sm:$0xff]  ;;  %v275_v31 = vld [vmem:[#allocation2 + $0xa8] sm:$0xff]  ;;  %v393_v32 = vld [vmem:[#allocation5 + $0x78] sm:$0xff]  ;;  %p729_p2 = pnand %p728_p1, %p870_p4 }
  0x27   : > { %313 = vmatpush.msra.mxu1 %v260_v14  ;;  %358 = vmatpush.msra.mxu2 %v347_v15  ;;  %v255_v29 = vld [vmem:[#allocation2 + $0x30] sm:$0xff]  ;;  %v254_v33 = vld [vmem:[#allocation2 + $0x28] sm:$0xff]  ;;  %v341_v35 = vld [vmem:[#allocation2 + $0x120] sm:$0xff] }
  0x28   : > { %291 = vmatpush.msra.mxu0 %v280_v16  ;;  %v392_v34 = vld [vmem:[#allocation5 + $0x70] sm:$0xff]  ;;  %v274_v36 = vld [vmem:[#allocation2 + $0xa0] sm:$0xff]  ;;  %398 = vmatpush.msra.mxu3 %v393_v32  ;;  %v391_v38 = vld [vmem:[#allocation5 + $0x68] sm:$0xff]  ;;  %p730_p3 = pneg %p729_p2 }
  0x29   : > { %314 = vmatpush.msra.mxu1 %v259_v17  ;;  %359 = vmatpush.msra.mxu2 %v346_v18  ;;  %v253_v37 = vld [vmem:[#allocation2 + $0x20] sm:$0xff]  ;;  %v340_v39 = vld [vmem:[#allocation2 + $0x118] sm:$0xff]  ;;  %v339_v43 = vld [vmem:[#allocation2 + $0x110] sm:$0xff] }
  0x2a   : > { %292 = vmatpush.msra.mxu0 %v279_v19  ;;  %v273_v40 = vld [vmem:[#allocation2 + $0x98] sm:$0xff]  ;;  %399 = vmatpush.msra.mxu3 %v392_v34  ;;  %v390_v42 = vld [vmem:[#allocation5 + $0x60] sm:$0xff]  ;;  %v272_v44 = vld [vmem:[#allocation2 + $0x90] sm:$0xff] }
  0x2b   : > { %315 = vmatpush.msra.mxu1 %v258_v20  ;;  %360 = vmatpush.msra.mxu2 %v345_v21  ;;  %v252_v41 = vld [vmem:[#allocation2 + $0x18] sm:$0xff]  ;;  %v251_v45 = vld [vmem:[#allocation2 + $0x10] sm:$0xff]  ;;  %v338_v47 = vld [vmem:[#allocation2 + $0x108] sm:$0xff] }
  0x2c   : > { %293 = vmatpush.msra.mxu0 %v278_v22  ;;  %400 = vmatpush.msra.mxu3 %v391_v38  ;;  %v389_v46 = vld [vmem:[#allocation5 + $0x58] sm:$0xff]  ;;  %v271_v48 = vld [vmem:[#allocation2 + $0x88] sm:$0xff]  ;;  %v388_v50 = vld [vmem:[#allocation5 + $0x50] sm:$0xff] }
  0x2d   : > { %316 = vmatpush.msra.mxu1 %v257_v23  ;;  %361 = vmatpush.msra.mxu2 %v344_v24  ;;  %v250_v49 = vld [vmem:[#allocation2 + $0x8] sm:$0xff]  ;;  %v337_v51 = vld [vmem:[#allocation2 + $0x100] sm:$0xff]  ;;  %v385_v59 = vld [vmem:[#allocation5 + $0x38] sm:$0xff] }
  0x2e   : > { %294 = vmatpush.msra.mxu0 %v277_v25  ;;  %401 = vmatpush.msra.mxu3 %v390_v42  ;;  %v270_v52 = vld [vmem:[#allocation2 + $0x80] sm:$0xff]  ;;  %v387_v57 = vld [vmem:[#allocation5 + $0x48] sm:$0xff]  ;;  %v384_v61 = vld [vmem:[#allocation5 + $0x30] sm:$0xff] }
  0x2f   : > { %317 = vmatpush.msra.mxu1 %v256_v26  ;;  %362 = vmatpush.msra.mxu2 %v343_v27  ;;  %v561_v53 = vld [vmem:[%s921_s5 + $0x2] sm:$0xff]  ;;  %v562_v60 = vld [vmem:[%s921_s5 + $0xa] sm:$0xff]  ;;  %v381_v2 = vld [vmem:[#allocation5 + $0x18] sm:$0xff] }
  0x30   : > { %295 = vmatpush.msra.mxu0 %v276_v28  ;;  %402 = vmatpush.msra.mxu3 %v389_v46  ;;  %v249_v54 = vld [vmem:[#allocation2] sm:$0xff]  ;;  %v560_v62 = vld [vmem:[%s921_s5 + $0x9] sm:$0xff] }
  0x31   : > { %318 = vmatpush.msra.mxu1 %v255_v29  ;;  %363 = vmatpush.msra.mxu2 %v342_v30  ;;  %v559_v55 = vld [vmem:[%s921_s5 + $0x1] sm:$0xff]  ;;  %v380_v3 = vld [vmem:[#allocation5 + $0x10] sm:$0xff]  ;;  %v650_v16 = vld [vmem:[%s972_s3] ss:$0 sm:$0xff]  ;;  %v422_v21 = vmul.f32 0.66, %v560_v62 }
  0x32   : > { %296 = vmatpush.msra.mxu0 %v275_v31  ;;  %v247_v56 = vld [vmem:[%s921_s5] sm:$0xff]  ;;  %403 = vmatpush.msra.mxu3 %v388_v50  ;;  %v248_v63 = vld [vmem:[%s921_s5 + $0x8] sm:$0xff]  ;;  %v421_v17 = vmul.f32 0.66, %v559_v55  ;;  %s731_s5 = scalar_lea.hbm %s973_s4, 32 }
  0x33   : > { %319 = vmatpush.msra.mxu1 %v254_v33  ;;  %364 = vmatpush.msra.mxu2 %v341_v35  ;;  %v386_v58 = vld [vmem:[#allocation5 + $0x40] sm:$0xff]  ;;  %v383_v0 = vld [vmem:[#allocation5 + $0x28] sm:$0xff]  ;;  %p733_p6 = scmp.lt.s32.totalorder %s731_s5, %s727_s18 }
  0x34   : > { %297 = vmatpush.msra.mxu0 %v274_v36  ;;  %404 = vmatpush.msra.mxu3 %v387_v57  ;;  %v382_v1 = vld [vmem:[#allocation5 + $0x20] sm:$0xff]  ;;  %v379_v4 = vld [vmem:[#allocation5 + $0x8] sm:$0xff] }
  0x35   : > { %320 = vmatpush.msra.mxu1 %v253_v37  ;;  %365 = vmatpush.msra.mxu2 %v340_v39  ;;  %v378_v5 = vld [vmem:[#allocation5] sm:$0xff]  ;;  %p734_p7 = por %p733_p6, %p732_p5 }
  0x36   : > { %298 = vmatpush.msra.mxu0 %v273_v40  ;;  %405 = vmatpush.msra.mxu3 %v386_v58 }
  0x37   : > { %321 = vmatpush.msra.mxu1 %v252_v41  ;;  %366 = vmatpush.msra.mxu2 %v339_v43  ;;  %p735_p9 = pnand %p734_p7, %p730_p3 }
  0x38   : > { %299 = vmatpush.msra.mxu0 %v272_v44  ;;  %406 = vmatpush.msra.mxu3 %v385_v59 }
  0x39   : > { %322 = vmatpush.msra.mxu1 %v251_v45  ;;  %367 = vmatpush.msra.mxu2 %v338_v47 }
  0x3a   : > { %300 = vmatpush.msra.mxu0 %v271_v48  ;;  %407 = vmatpush.msra.mxu3 %v384_v61 }
  0x3b   : > { %323 = vmatpush.msra.mxu1 %v250_v49  ;;  %368 = vmatpush.msra.mxu2 %v337_v51 }
  0x3c   : > { %301 = vmatpush.msra.mxu0 %v270_v52  ;;  %369 = vmatmul.f32.vlgmr.msra.gmra.mxu2 %v561_v53 }
  0x3d   : > { %324 = vmatpush.msra.mxu1 %v249_v54  ;;  %302 = vmatmul.f32.vlgmr.msra.gmra.mxu0 %v559_v55 }
  0x3e   : > { %325 = vmatmul.f32.vlgmr.msra.gmra.mxu1 %v247_v56  ;;  %408 = vmatpush.msra.mxu3 %v383_v0 }
  0x40   : > { %409 = vmatpush.msra.mxu3 %v382_v1 }
  0x42   : > { %410 = vmatpush.msra.mxu3 %v381_v2 }
  0x44   : > { %372 = vmatmul.f32.gmra.mxu2 %v562_v60  ;;  %411 = vmatpush.msra.mxu3 %v380_v3 }
  0x45   : > { %305 = vmatmul.f32.gmra.mxu0 %v560_v62 }
  0x46   : > { %328 = vmatmul.f32.gmra.mxu1 %v248_v63  ;;  %412 = vmatpush.msra.mxu3 %v379_v4 }
  0x48   : > { %413 = vmatpush.msra.mxu3 %v378_v5 }
  0xba   : > { %v303_v6 = vpop.f32.mrf.mxu0 }
  0xbb   : > { %v326_v7 = vpop.f32.mrf.mxu1 }
  0xbc   : > { %v327_v8 = vadd.f32 %v326_v7, %v303_v6 }
  0xbf   : > { %v370_v9 = vpop.f32.mrf.mxu2 }
  0xc0   : > { %v376_v10 = vadd.f32 %v370_v9, %v327_v8 }
  0xc2   : > { %414 = vmatmul.f32.vlgmr.msra.gmra.mxu3 %v376_v10  ;;  %v306_v11 = vpop.f32.mrf.mxu0 }
  0xc3   : > { %v329_v12 = vpop.f32.mrf.mxu1 }
  0xc4   : > { %v330_v13 = vadd.f32 %v329_v12, %v306_v11 }
  0xc7   : > { %v373_v14 = vpop.f32.mrf.mxu2 }
  0xc8   : > { %v377_v15 = vadd.f32 %v373_v14, %v330_v13 }
  0xca   : > { %417 = vmatmul.f32.gmra.mxu3 %v377_v15 }
 0x145   : > { %v415_v18 = vpop.f32.mrf.mxu3 }
 0x146   : > { %v416_v19 = vadd.f32 %v650_v16, %v415_v18 }
 0x148   : > { %v423_v20 = vadd.f32 %v421_v17, %v416_v19 }
 0x14a   : > { %425 = vst [vmem:[%s238_s14] sm:$0xff] %v423_v20 }
 0x14d   : > { %v418_v22 = vpop.f32.mrf.mxu3 }
 0x14e   : > { %v419_v23 = vadd.f32 %v650_v16, %v418_v22 }
 0x150   : > { %v424_v24 = vadd.f32 %v422_v21, %v419_v23 }
 0x152   : > { %426 = vst [vmem:[%s238_s14 + $0x8] sm:$0xff] %v424_v24 }
 0x153   : > { %738 = shalt.err (!%p735_p9)
}
 0x154   : > { %s803_s6 = smov 128   ;;  %s804_s9 = smov 8  }
 0x155   : > { %578 = dma.vmem_to_hbm [thread:$0]  (%p870_p4), %s443_s21, 256, %s445_s22, %s428_s24, %s803_s6, %s803_s6, %s804_s9  }
 0x156 PF: > { %p595_p10 = scmp.ge.s32.totalorder %s797_s20, 2  ;;  %s459_s10 = sand.u32 1, %s777_s15  }
 0x157   : > { %s460_s11 = scalar_lea.sflag [#allocation4], %s459_s10 }
 0x158   : > { %p588_p11 = pnand %p595_p10, %p877_p8 }
 0x15a   : > { %p589_p12 = pneg %p588_p11 }
 0x15c   : > { %772 = dma.done.wait (%p589_p12), %s460_s11, 256  }
 0x15d   : > { %774 = vsyncadd (%p589_p12), %s460_s11, 4294967040  ;;  %s19_s20 = sadd.s32 1, %s797_s20   ;;  %s978_s15 = smov %s781_s16 }
 0x15e   : > { %p16_p13 = scmp.ge.s32.totalorder %s19_s20, 4   ;;  %s979_s16 = smov %s785_s17 }
 0x15f   : > { %s980_s17 = smov %s883_s28  ;;  %s981_s18 = smov %s793_s19 }
 0x160   : > { %s982_s19 = smov %s984_s23  ;;  %18 = sbr.rel (!%p16_p13) target bundleno = 6 (0x6), region = 85 }
 0x165   :  { %466 = vsyncpa [#allocation3], 1 }
 0x166   :  { %468 = vsyncpa [#allocation3 + $0x1], 1 }
 0x167   :  { %469 = vsyncpa [#allocation6], 1 }
 0x168   :  { %470 = vsyncpa [#allocation4], 1 }
 0x169   :  { %472 = vsyncpa [#allocation4 + $0x1], 1 }

</bundles_post_ra>
